<compile_context>
chip_gen: v5e
topology: v5e:2x2
jax: 0.10.0
libtpu: 0.0.40
codegen_flags: <defaults>
</compile_context>

<pallas_src>
import functools

import jax
import jax.numpy as jnp
from jax import lax
from jax.experimental import pallas as pl
from jax.experimental.pallas import tpu as pltpu


# --------------------------------------------------------------------------- #
# Kernel
# --------------------------------------------------------------------------- #
def basic_block_kernel(x_ref, w1_ref, b1_ref, w2_ref, b2_ref, o_ref):
    """One lane-packed image pair: x_ref is (H, pack*W*C), channels minor."""
    H = x_ref.shape[0]
    x = x_ref[...]                                        # (H, 128) f32

    # Row-halo boundary masks, computed once and reused by both convs
    # (identity residual => both convs see the same (H, lanes) shape).
    row = lax.broadcasted_iota(jnp.int32, x.shape, 0)
    not_top = row != 0
    not_bot = row != H - 1

    def conv_bn(a, w_ref, b_ref):
        # rows i-1 / i+1 via XLU roll (non-negative shifts only), zero-filled
        # at the image boundary.
        up = jnp.where(not_top, pltpu.roll(a, shift=1, axis=0), 0.0)      # a[i-1]
        dn = jnp.where(not_bot, pltpu.roll(a, shift=H - 1, axis=0), 0.0)  # a[i+1]
        # Single K-concatenated MXU dot; column taps, the 'SAME' zero padding
        # and the folded BN scale are all encoded in the banded bf16 weight.
        a_cat = jnp.concatenate([up, a, dn], axis=-1).astype(jnp.bfloat16)
        y = jnp.dot(a_cat, w_ref[...], preferred_element_type=jnp.float32)
        return y + b_ref[...]                             # folded-BN bias (f32)

    z = jnp.maximum(conv_bn(x, w1_ref, b1_ref), 0.0)      # conv1+adapter, BN1, ReLU
    y = conv_bn(z, w2_ref, b2_ref)                        # conv2+adapter, BN2
    o_ref[...] = jnp.maximum(y + x, 0.0)                  # residual + ReLU


# --------------------------------------------------------------------------- #
# One-time parameter preparation (hoisted out of the per-call forward path)
# --------------------------------------------------------------------------- #
def _banded_weights(w_hwio, W):
    """(3,3,Cin,Cout) HWIO conv weight -> (3, W*Cin, W*Cout) banded matrices.

    bw[dy, jin*Cin+ci, jout*Cout+co] = w[dy, jin-jout+1, ci, co] for in-range
    column taps; zero blocks encode the left/right 'SAME' padding.  Pure jnp,
    no host sync, constant-folds under jit.
    """
    kh, kw, Cin, Cout = w_hwio.shape
    bands = []
    for dy in range(kh):
        acc = jnp.zeros((W * Cin, W * Cout), w_hwio.dtype)
        for dx in range(kw):
            sel = jnp.eye(W, W, k=1 - dx, dtype=w_hwio.dtype)   # jin == jout+dx-1
            acc = acc + jnp.kron(sel, w_hwio[dy, dx])
        bands.append(acc)
    return jnp.stack(bands)


def prepare_block_params(params, W, pack=2):
    """Fold adapters + BN scale, build banded/packed bf16 weights. Call once."""
    Cout = params["w3a"].shape[-1]
    # Parallel 1x1 adapters folded into the 3x3 center taps; eval-mode BN scale
    # folded into the output channels (both algebraically identical).
    w3a = params["w3a"].at[1, 1].add(params["w1a"]) * params["bn1_scale"].reshape(1, 1, 1, Cout)
    w3b = params["w3b"].at[1, 1].add(params["w1b"]) * params["bn2_scale"].reshape(1, 1, 1, Cout)

    def banded_packed(w):
        bw = _banded_weights(w, W)                        # (3, W*Cin, W*Cout)
        eye = jnp.eye(pack, dtype=bw.dtype)               # block-diag per image
        bwp = jnp.stack([jnp.kron(eye, bw[dy]) for dy in range(3)])
        # stack the 3 kernel-row bands along K; bf16 operands for the MXU.
        return bwp.reshape(3 * bwp.shape[1], bwp.shape[2]).astype(jnp.bfloat16)

    b1 = jnp.tile(params["bn1_bias"].reshape(-1), pack * W).reshape(1, -1).astype(jnp.float32)
    b2 = jnp.tile(params["bn2_bias"].reshape(-1), pack * W).reshape(1, -1).astype(jnp.float32)
    return {"w1": banded_packed(w3a), "b1": b1, "w2": banded_packed(w3b), "b2": b2}


# --------------------------------------------------------------------------- #
# Forward
# --------------------------------------------------------------------------- #
@functools.partial(jax.jit, static_argnames=("pack",))
def basic_block_forward(x_nchw, w1, b1, w2, b2, *, pack=2):
    N, C, H, W = x_nchw.shape
    WCop = b1.shape[1]                         # pack * W * Cout
    Cout = WCop // (pack * W)
    assert C == Cout, "identity residual (shortcut=0) requires Cin == Cout"
    assert N % pack == 0, "batch must be a multiple of the lane-pack factor"
    P = N // pack
    WCp = pack * W * C                         # 128 lanes at the test config

    # NCHW -> NHWC -> lane-pack `pack` images per grid step: (P, H, pack*W*C).
    x = jnp.transpose(x_nchw, (0, 2, 3, 1)).astype(jnp.float32)      # (N,H,W,C)
    x = x.reshape(P, pack, H, W * C).transpose(0, 2, 1, 3).reshape(P, H, WCp)

    flops = 2 * P * 2 * H * (3 * WCp) * WCop
    bytes_accessed = ((x.size + P * H * WCop) * 4
                      + (w1.size + w2.size) * 2 + (b1.size + b2.size) * 4)

    out = pl.pallas_call(
        basic_block_kernel,
        out_shape=jax.ShapeDtypeStruct((P, H, WCop), jnp.float32),
        grid_spec=pltpu.PrefetchScalarGridSpec(
            num_scalar_prefetch=0,
            grid=(P,),
            in_specs=[
                pl.BlockSpec((None, H, WCp), lambda p: (p, 0, 0)),
                pl.BlockSpec(w1.shape, lambda p: (0, 0)),
                pl.BlockSpec(b1.shape, lambda p: (0, 0)),
                pl.BlockSpec(w2.shape, lambda p: (0, 0)),
                pl.BlockSpec(b2.shape, lambda p: (0, 0)),
            ],
            out_specs=pl.BlockSpec((None, H, WCop), lambda p: (p, 0, 0)),
        ),
        compiler_params=pltpu.CompilerParams(
            # pair iterations are independent -> shard across v7x's 2 TCs
            dimension_semantics=("parallel",)),
        cost_estimate=pl.CostEstimate(flops=flops, transcendentals=0,
                                      bytes_accessed=bytes_accessed),
    )(x, w1, b1, w2, b2)

    # lane-packed (P, H, pack*W*Cout) -> NCHW
    out = out.reshape(P, H, pack, W, Cout).transpose(0, 2, 4, 1, 3)
    return out.reshape(N, Cout, H, W)


# --------------------------------------------------------------------------- #
# Test harness
# --------------------------------------------------------------------------- #
def make_params(key, c_in, c_out):
    ks = jax.random.split(key, 12)
    eps = 1e-5

    def bn_fold(kg, kb, km, kv, c):
        gamma = 1.0 + 0.1 * jax.random.normal(kg, (c,), jnp.float32)
        beta = 0.1 * jax.random.normal(kb, (c,), jnp.float32)
        mean = 0.1 * jax.random.normal(km, (c,), jnp.float32)
        var = 0.5 + jnp.abs(jax.random.normal(kv, (c,), jnp.float32)) * 0.1
        scale = gamma / jnp.sqrt(var + eps)
        bias = beta - mean * scale
        return scale.reshape(1, c), bias.reshape(1, c)

    bn1s, bn1b = bn_fold(ks[4], ks[5], ks[6], ks[7], c_out)
    bn2s, bn2b = bn_fold(ks[8], ks[9], ks[10], ks[11], c_out)
    return {
        # conv3x3 weights stored HWIO (kh, kw, Cin, Cout); torch is (Cout, Cin, kh, kw)
        "w3a": 0.2 * jax.random.normal(ks[0], (3, 3, c_in, c_out), jnp.float32),
        "w1a": 0.2 * jax.random.normal(ks[1], (c_in, c_out), jnp.float32),
        "w3b": 0.2 * jax.random.normal(ks[2], (3, 3, c_out, c_out), jnp.float32),
        "w1b": 0.2 * jax.random.normal(ks[3], (c_out, c_out), jnp.float32),
        "bn1_scale": bn1s, "bn1_bias": bn1b,
        "bn2_scale": bn2s, "bn2_bias": bn2b,
    }


def reference_forward(x_nchw, p):
    # pure-JAX f32 reference (XLA convs) for verification
    x = jnp.transpose(x_nchw, (0, 2, 3, 1)).astype(jnp.float32)
    dn = ("NHWC", "HWIO", "NHWC")
    c_in = x.shape[-1]
    c_out = p["w3a"].shape[-1]

    y = lax.conv_general_dilated(x, p["w3a"], (1, 1), "SAME", dimension_numbers=dn)
    y = y + lax.conv_general_dilated(x, p["w1a"].reshape(1, 1, c_in, c_out),
                                     (1, 1), "SAME", dimension_numbers=dn)
    y = y * p["bn1_scale"].reshape(1, 1, 1, -1) + p["bn1_bias"].reshape(1, 1, 1, -1)
    z = jnp.maximum(y, 0.0)

    w = lax.conv_general_dilated(z, p["w3b"], (1, 1), "SAME", dimension_numbers=dn)
    w = w + lax.conv_general_dilated(z, p["w1b"].reshape(1, 1, c_out, c_out),
                                     (1, 1), "SAME", dimension_numbers=dn)
    w = w * p["bn2_scale"].reshape(1, 1, 1, -1) + p["bn2_bias"].reshape(1, 1, 1, -1)
    out = jnp.maximum(w + x, 0.0)
    return jnp.transpose(out, (0, 3, 1, 2))


if __name__ == "__main__":
    N, C, H, W = 2, 4, 16, 16          # in_planes = planes = 4, stride = 1
    key = jax.random.PRNGKey(0)
    kx, kp = jax.random.split(key)
    x = jax.random.normal(kx, (N, C, H, W), jnp.float32)
    params = make_params(kp, C, C)

    # one-time weight/BN prep (hoisted out of the forward path)
    prep = prepare_block_params(params, W, pack=2)

    out = basic_block_forward(x, prep["w1"], prep["b1"], prep["w2"], prep["b2"], pack=2)
    out = jax.block_until_ready(out)

    ref = jax.block_until_ready(reference_forward(x, params))
    assert out.shape == (N, C, H, W)
    # bf16 MXU operands across two chained convs -> looser tolerance than f32.
    max_err = float(jnp.max(jnp.abs(out - ref)))
    assert jnp.allclose(out, ref, atol=3e-2, rtol=3e-2), max_err

    print("KERNEL_OK")
</pallas_src>

<mosaic_0001>
module attributes {stable_mosaic.version = 11 : i64} {
  func.func @basic_block_kernel(%arg0: i32, %arg1: memref<1x16x128xf32, #tpu.memory_space<vmem>>, %arg2: memref<384x128xbf16, #tpu.memory_space<vmem>>, %arg3: memref<1x128xf32, #tpu.memory_space<vmem>>, %arg4: memref<384x128xbf16, #tpu.memory_space<vmem>>, %arg5: memref<1x128xf32, #tpu.memory_space<vmem>>, %arg6: memref<1x16x128xf32, #tpu.memory_space<vmem>>) attributes {dimension_semantics = [#tpu.dimension_semantics<parallel>], iteration_bounds = array<i64: 1>, scalar_prefetch = 0 : i64, scratch_operands = 0 : i64, tpu.core_type = #tpu.core_type<tc>, window_params = [{transform_indices = @transform_0, window_bounds = array<i64: 1, 16, 128>}, {pipeline_mode = #tpu.pipeline_mode<synchronous>, transform_indices = @transform_1, window_bounds = array<i64: 384, 128>}, {pipeline_mode = #tpu.pipeline_mode<synchronous>, transform_indices = @transform_2, window_bounds = array<i64: 1, 128>}, {pipeline_mode = #tpu.pipeline_mode<synchronous>, transform_indices = @transform_3, window_bounds = array<i64: 384, 128>}, {pipeline_mode = #tpu.pipeline_mode<synchronous>, transform_indices = @transform_4, window_bounds = array<i64: 1, 128>}, {transform_indices = @transform_5, window_bounds = array<i64: 1, 16, 128>}]} {
    %c0 = arith.constant 0 : index
    %c0_0 = arith.constant 0 : index
    %c0_1 = arith.constant 0 : index
    %0 = vector.load %arg1[%c0, %c0_0, %c0_1] : memref<1x16x128xf32, #tpu.memory_space<vmem>>, vector<1x16x128xf32>
    %1 = vector.shape_cast %0 : vector<1x16x128xf32> to vector<16x128xf32>
    %2 = tpu.iota {dimensions = array<i32: 0>} : vector<16x128xi32>
    %c0_i32 = arith.constant 0 : i32
    %3 = vector.broadcast %c0_i32 : i32 to vector<16x128xi32>
    %4 = arith.cmpi ne, %2, %3 : vector<16x128xi32>
    %c15_i32 = arith.constant 15 : i32
    %5 = vector.broadcast %c15_i32 : i32 to vector<16x128xi32>
    %6 = arith.cmpi ne, %2, %5 : vector<16x128xi32>
    %c1_i32 = arith.constant 1 : i32
    %7 = tpu.dynamic_rotate %1 by %c1_i32 dim 0 : vector<16x128xf32>, i32 -> vector<16x128xf32>
    %cst = arith.constant 0.000000e+00 : f32
    %8 = vector.broadcast %cst : f32 to vector<16x128xf32>
    %9 = arith.select %4, %7, %8 : vector<16x128xi1>, vector<16x128xf32>
    %c15_i32_2 = arith.constant 15 : i32
    %10 = tpu.dynamic_rotate %1 by %c15_i32_2 dim 0 : vector<16x128xf32>, i32 -> vector<16x128xf32>
    %cst_3 = arith.constant 0.000000e+00 : f32
    %11 = vector.broadcast %cst_3 : f32 to vector<16x128xf32>
    %12 = arith.select %6, %10, %11 : vector<16x128xi1>, vector<16x128xf32>
    %13 = tpu.concatenate %9, %1, %12 in 1 : vector<16x128xf32>, vector<16x128xf32>, vector<16x128xf32> -> vector<16x384xf32>
    %14 = arith.truncf %13 : vector<16x384xf32> to vector<16x384xbf16>
    %c0_4 = arith.constant 0 : index
    %c0_5 = arith.constant 0 : index
    %15 = vector.load %arg2[%c0_4, %c0_5] : memref<384x128xbf16, #tpu.memory_space<vmem>>, vector<384x128xbf16>
    %cst_6 = arith.constant dense<0.000000e+00> : vector<16x128xf32>
    %16 = tpu.matmul %14, %15, %cst_6 {dimension_numbers = #tpu.dot_dimension_numbers<[1], [0], [0], [1], [0, 0, 1, 1], [], []>} : vector<16x384xbf16>, vector<384x128xbf16>, vector<16x128xf32> -> vector<16x128xf32>
    %c0_7 = arith.constant 0 : index
    %c0_8 = arith.constant 0 : index
    %17 = vector.load %arg3[%c0_7, %c0_8] : memref<1x128xf32, #tpu.memory_space<vmem>>, vector<1x128xf32>
    %18 = vector.broadcast %17 : vector<1x128xf32> to vector<16x128xf32>
    %19 = arith.addf %16, %18 : vector<16x128xf32>
    %cst_9 = arith.constant 0.000000e+00 : f32
    %20 = vector.broadcast %cst_9 : f32 to vector<16x128xf32>
    %21 = arith.maximumf %19, %20 : vector<16x128xf32>
    %c1_i32_10 = arith.constant 1 : i32
    %22 = tpu.dynamic_rotate %21 by %c1_i32_10 dim 0 : vector<16x128xf32>, i32 -> vector<16x128xf32>
    %cst_11 = arith.constant 0.000000e+00 : f32
    %23 = vector.broadcast %cst_11 : f32 to vector<16x128xf32>
    %24 = arith.select %4, %22, %23 : vector<16x128xi1>, vector<16x128xf32>
    %c15_i32_12 = arith.constant 15 : i32
    %25 = tpu.dynamic_rotate %21 by %c15_i32_12 dim 0 : vector<16x128xf32>, i32 -> vector<16x128xf32>
    %cst_13 = arith.constant 0.000000e+00 : f32
    %26 = vector.broadcast %cst_13 : f32 to vector<16x128xf32>
    %27 = arith.select %6, %25, %26 : vector<16x128xi1>, vector<16x128xf32>
    %28 = tpu.concatenate %24, %21, %27 in 1 : vector<16x128xf32>, vector<16x128xf32>, vector<16x128xf32> -> vector<16x384xf32>
    %29 = arith.truncf %28 : vector<16x384xf32> to vector<16x384xbf16>
    %c0_14 = arith.constant 0 : index
    %c0_15 = arith.constant 0 : index
    %30 = vector.load %arg4[%c0_14, %c0_15] : memref<384x128xbf16, #tpu.memory_space<vmem>>, vector<384x128xbf16>
    %cst_16 = arith.constant dense<0.000000e+00> : vector<16x128xf32>
    %31 = tpu.matmul %29, %30, %cst_16 {dimension_numbers = #tpu.dot_dimension_numbers<[1], [0], [0], [1], [0, 0, 1, 1], [], []>} : vector<16x384xbf16>, vector<384x128xbf16>, vector<16x128xf32> -> vector<16x128xf32>
    %c0_17 = arith.constant 0 : index
    %c0_18 = arith.constant 0 : index
    %32 = vector.load %arg5[%c0_17, %c0_18] : memref<1x128xf32, #tpu.memory_space<vmem>>, vector<1x128xf32>
    %33 = vector.broadcast %32 : vector<1x128xf32> to vector<16x128xf32>
    %34 = arith.addf %31, %33 : vector<16x128xf32>
    %35 = arith.addf %34, %1 : vector<16x128xf32>
    %cst_19 = arith.constant 0.000000e+00 : f32
    %36 = vector.broadcast %cst_19 : f32 to vector<16x128xf32>
    %37 = arith.maximumf %35, %36 : vector<16x128xf32>
    %c0_20 = arith.constant 0 : index
    %c0_21 = arith.constant 0 : index
    %c0_22 = arith.constant 0 : index
    %38 = vector.load %arg6[%c0_20, %c0_21, %c0_22] : memref<1x16x128xf32, #tpu.memory_space<vmem>>, vector<1x16x128xf32>
    %39 = vector.shape_cast %38 : vector<1x16x128xf32> to vector<16x128xf32>
    %40 = vector.shape_cast %37 : vector<16x128xf32> to vector<1x16x128xf32>
    tpu.vector_store %arg6[%c0_20, %c0_21, %c0_22], %40 {strides = array<i32>} : memref<1x16x128xf32, #tpu.memory_space<vmem>>, vector<1x16x128xf32>,
    return
  }
  func.func @transform_0(%arg0: i32) -> (i32, i32, i32) {
    %c0_i32 = arith.constant 0 : i32
    %c0_i32_0 = arith.constant 0 : i32
    %c0_i32_1 = arith.constant 0 : i32
    return %arg0, %c0_i32, %c0_i32_0 : i32, i32, i32
  }
  func.func @transform_1(%arg0: i32) -> (i32, i32) {
    %c0_i32 = arith.constant 0 : i32
    %c0_i32_0 = arith.constant 0 : i32
    %c0_i32_1 = arith.constant 0 : i32
    return %c0_i32, %c0_i32_0 : i32, i32
  }
  func.func @transform_2(%arg0: i32) -> (i32, i32) {
    %c0_i32 = arith.constant 0 : i32
    %c0_i32_0 = arith.constant 0 : i32
    %c0_i32_1 = arith.constant 0 : i32
    return %c0_i32, %c0_i32_0 : i32, i32
  }
  func.func @transform_3(%arg0: i32) -> (i32, i32) {
    %c0_i32 = arith.constant 0 : i32
    %c0_i32_0 = arith.constant 0 : i32
    %c0_i32_1 = arith.constant 0 : i32
    return %c0_i32, %c0_i32_0 : i32, i32
  }
  func.func @transform_4(%arg0: i32) -> (i32, i32) {
    %c0_i32 = arith.constant 0 : i32
    %c0_i32_0 = arith.constant 0 : i32
    %c0_i32_1 = arith.constant 0 : i32
    return %c0_i32, %c0_i32_0 : i32, i32
  }
  func.func @transform_5(%arg0: i32) -> (i32, i32, i32) {
    %c0_i32 = arith.constant 0 : i32
    %c0_i32_0 = arith.constant 0 : i32
    %c0_i32_1 = arith.constant 0 : i32
    return %arg0, %c0_i32, %c0_i32_0 : i32, i32, i32
  }
}

</mosaic_0001>

<bundles_post_ra>
// kernel: basic_block_forward.1
= control target key start
LH: loop header
LB: loop body
LE: loop exit
PB: predicated region body
PF: predicated region fallthrough
CT: control target
= control target key end

     0   :  { %v22_v17 = vlaneseq  ;;  %vm804_vm4 = vmmov 1   ;;  %s1047_s1 = inlined_call_operand.vmem [shape: bf16[384,128], index: 1, kind: input, shape index: {}]   ;;  %s1048_s3 = inlined_call_operand.vmem [shape: bf16[384,128], index: 3, kind: input, shape index: {}]   ;;  %s1049_s2 = inlined_call_operand.vmem [shape: f32[1,128], index: 2, kind: input, shape index: {}]   ;;  %s1050_s0 = inlined_call_operand.vmem [shape: f32[1,16,128], index: 0, kind: input, shape index: {}]   ;;  %s1051_s4 = inlined_call_operand.vmem [shape: f32[1,128], index: 4, kind: input, shape index: {}]   ;;  %s1052_s5 = inlined_call_operand.vmem [shape: f32[1,16,128], index: 5, kind: output, shape index: {}]  }
   0x1   :  { %v760_v0 = vld [vmem:[%s1047_s1 + $0x38] sm:$0xff]  ;;  %v759_v3 = vld [vmem:[%s1047_s1 + $0x30] sm:$0xff]  ;;  %v758_v6 = vld [vmem:[%s1047_s1 + $0x28] sm:$0xff] }
   0x2   :  { %v768_v1 = vld [vmem:[%s1047_s1 + $0x78] sm:$0xff]  ;;  %242 = vmatpush.bf16.msra.mxu0 %v760_v0  ;;  %v767_v4 = vld [vmem:[%s1047_s1 + $0x70] sm:$0xff]  ;;  %v766_v7 = vld [vmem:[%s1047_s1 + $0x68] sm:$0xff]  ;;  %v905_v23 = vshrl.u32 %v22_v17, 7 }
   0x3   :  { %v776_v2 = vld [vmem:[%s1047_s1 + $0xb8] sm:$0xff]  ;;  %256 = vmatpush.bf16.msra.mxu1 %v768_v1  ;;  %v775_v5 = vld [vmem:[%s1047_s1 + $0xb0] sm:$0xff]  ;;  %v774_v8 = vld [vmem:[%s1047_s1 + $0xa8] sm:$0xff] }
   0x4   :  { %270 = vmatpush.bf16.msra.mxu2 %v776_v2  ;;  %v784_v9 = vld [vmem:[%s1048_s3 + $0x38] sm:$0xff]  ;;  %v757_v10 = vld [vmem:[%s1047_s1 + $0x20] sm:$0xff]  ;;  %v783_v13 = vld [vmem:[%s1048_s3 + $0x30] sm:$0xff]  ;;  %vm31_vm0 = vcmp.lt.s32.totalorder %v905_v23, 1  ;;  %v24_v31 = vadd.s32 8, %v905_v23  ;;  %vm38_vm1 = vcmp.lt.s32.totalorder %v905_v23, 7 }
   0x5   :  { %v765_v11 = vld [vmem:[%s1047_s1 + $0x60] sm:$0xff]  ;;  %497 = vmatpush.bf16.msra.mxu3 %v784_v9  ;;  %v756_v14 = vld [vmem:[%s1047_s1 + $0x18] sm:$0xff]  ;;  %v755_v18 = vld [vmem:[%s1047_s1 + $0x10] sm:$0xff]  ;;  %vm25_vm2 = vcmp.ne.s32.totalorder %v905_v23, 0 }
   0x6   :  { %243 = vmatpush.bf16.msra.mxu0 %v759_v3  ;;  %v773_v12 = vld [vmem:[%s1047_s1 + $0xa0] sm:$0xff]  ;;  %v764_v15 = vld [vmem:[%s1047_s1 + $0x58] sm:$0xff]  ;;  %v763_v19 = vld [vmem:[%s1047_s1 + $0x50] sm:$0xff]  ;;  %vm28_vm3 = vcmp.ne.s32.totalorder %v24_v31, 15 }
   0x7   :  { %257 = vmatpush.bf16.msra.mxu1 %v767_v4  ;;  %v772_v16 = vld [vmem:[%s1047_s1 + $0x98] sm:$0xff]  ;;  %v771_v20 = vld [vmem:[%s1047_s1 + $0x90] sm:$0xff]  ;;  %v898_v21 = vld [vmem:[%s1050_s0] sm:$0xff] }
   0x8   :  { %271 = vmatpush.bf16.msra.mxu2 %v775_v5  ;;  %v903_v22 = vld [vmem:[%s1050_s0 + $0x8] sm:$0xff]  ;;  %v29_v26 = vrot.slane %v898_v21, 7  ;;  %v36_v29 = vrot.slane %v898_v21, 1  ;;  %v753_v32 = vld [vmem:[%s1047_s1] sm:$0xff]  ;;  %v792_v39 = vld [vmem:[%s1048_s3 + $0x78] sm:$0xff] }
   0x9   :  { %498 = vmatpush.bf16.msra.mxu3 %v783_v13  ;;  %v754_v24 = vld [vmem:[%s1047_s1 + $0x8] sm:$0xff]  ;;  %v30_v27 = vrot.slane %v903_v22, 7  ;;  %v37_v30 = vrot.slane %v903_v22, 1  ;;  %v761_v33 = vld [vmem:[%s1047_s1 + $0x40] sm:$0xff]  ;;  %v800_v40 = vld [vmem:[%s1048_s3 + $0xb8] sm:$0xff]  ;;  %v44_v42 = vpack.c.bf16 %v903_v22, %v898_v21 }
   0xa   :  { %244 = vmatpush.bf16.msra.mxu0 %v758_v6  ;;  %v762_v25 = vld [vmem:[%s1047_s1 + $0x48] sm:$0xff]  ;;  %v769_v36 = vld [vmem:[%s1047_s1 + $0x80] sm:$0xff]  ;;  %vm949_vm5 = vmpackc.low %vm804_vm4, %vm25_vm2 }
   0xb   :  { %258 = vmatpush.bf16.msra.mxu1 %v766_v7  ;;  %v770_v28 = vld [vmem:[%s1047_s1 + $0x88] sm:$0xff]  ;;  %v32_v34 = vsel %vm31_vm0, %v29_v26, %v30_v27  ;;  %v33_v35 = vsel %vm31_vm0, %v30_v27, %v29_v26  ;;  %v39_v37 = vsel %vm38_vm1, %v36_v29, %v37_v30  ;;  %v40_v38 = vsel %vm38_vm1, %v37_v30, %v36_v29  ;;  %vm953_vm6 = vmpackc.low %vm28_vm3, %vm804_vm4  ;;  %v791_v46 = vld [vmem:[%s1048_s3 + $0x70] sm:$0xff] }
   0xc   :  { %272 = vmatpush.bf16.msra.mxu2 %v774_v8  ;;  %v646_v41 = vpack.c.bf16 %v32_v34, %v33_v35  ;;  %v649_v44 = vpack.c.bf16 %v40_v38, %v39_v37  ;;  %v799_v47 = vld [vmem:[%s1048_s3 + $0xb0] sm:$0xff]  ;;  %v790_v48 = vld [vmem:[%s1048_s3 + $0x68] sm:$0xff]  ;;  %v789_v51 = vld [vmem:[%s1048_s3 + $0x60] sm:$0xff] }
   0xd   :  { %v782_v49 = vld [vmem:[%s1048_s3 + $0x28] sm:$0xff]  ;;  %v781_v52 = vld [vmem:[%s1048_s3 + $0x20] sm:$0xff]  ;;  %v788_v54 = vld [vmem:[%s1048_s3 + $0x58] sm:$0xff] }
   0xe   :  { %245 = vmatpush.bf16.msra.mxu0 %v757_v10  ;;  %v798_v50 = vld [vmem:[%s1048_s3 + $0xa8] sm:$0xff]  ;;  %499 = vmatpush.bf16.msra.mxu3 %v782_v49  ;;  %v797_v53 = vld [vmem:[%s1048_s3 + $0xa0] sm:$0xff]  ;;  %v780_v55 = vld [vmem:[%s1048_s3 + $0x18] sm:$0xff] }
   0xf   :  { %259 = vmatpush.bf16.msra.mxu1 %v765_v11  ;;  %v796_v56 = vld [vmem:[%s1048_s3 + $0x98] sm:$0xff]  ;;  %v787_v57 = vld [vmem:[%s1048_s3 + $0x50] sm:$0xff]  ;;  %v786_v60 = vld [vmem:[%s1048_s3 + $0x48] sm:$0xff] }
  0x10   :  { %273 = vmatpush.bf16.msra.mxu2 %v773_v12  ;;  %v779_v58 = vld [vmem:[%s1048_s3 + $0x10] sm:$0xff]  ;;  %v778_v61 = vld [vmem:[%s1048_s3 + $0x8] sm:$0xff]  ;;  %v785_v63 = vld [vmem:[%s1048_s3 + $0x40] sm:$0xff] }
  0x11   :  { %v795_v59 = vld [vmem:[%s1048_s3 + $0x90] sm:$0xff]  ;;  %v794_v62 = vld [vmem:[%s1048_s3 + $0x88] sm:$0xff]  ;;  %v777_v0 = vld [vmem:[%s1048_s3] sm:$0xff] }
  0x12   :  { %246 = vmatpush.bf16.msra.mxu0 %v756_v14  ;;  %500 = vmatpush.bf16.msra.mxu3 %v781_v52  ;;  %v793_v1 = vld [vmem:[%s1048_s3 + $0x80] sm:$0xff] }
  0x13   :  { %260 = vmatpush.bf16.msra.mxu1 %v764_v15  ;;  %v802_v2 = vld [vmem:[%s1049_s2] ss:$0 sm:$0xff] }
  0x14   :  { %274 = vmatpush.bf16.msra.mxu2 %v772_v16  ;;  %v803_v31 = vld [vmem:[%s1051_s4] ss:$0 sm:$0xff] }
  0x16   :  { %247 = vmatpush.bf16.msra.mxu0 %v755_v18  ;;  %501 = vmatpush.bf16.msra.mxu3 %v780_v55 }
  0x17   :  { %261 = vmatpush.bf16.msra.mxu1 %v763_v19 }
  0x18   :  { %275 = vmatpush.bf16.msra.mxu2 %v771_v20 }
  0x1a   :  { %248 = vmatpush.bf16.msra.mxu0 %v754_v24  ;;  %502 = vmatpush.bf16.msra.mxu3 %v779_v58 }
  0x1b   :  { %262 = vmatpush.bf16.msra.mxu1 %v762_v25 }
  0x1c   :  { %276 = vmatpush.bf16.msra.mxu2 %v770_v28 }
  0x1e   :  { %249 = vmatpush.bf16.msra.mxu0 %v753_v32  ;;  %503 = vmatpush.bf16.msra.mxu3 %v778_v61 }
  0x1f   :  { %263 = vmatpush.bf16.msra.mxu1 %v761_v33 }
  0x20   :  { %277 = vmatpush.bf16.msra.mxu2 %v769_v36 }
  0x21   :  { %647 = vmatmul.msk.bf16.vlgmr.msra.gmra.mxu0 %vm949_vm5, %v646_v41 }
  0x22   :  { %511 = vmatpush.bf16.msrb.mxu0 %v792_v39  ;;  %264 = vmatmul.bf16.vlgmr.msra.gmra.mxu1 %v44_v42 }
  0x23   :  { %525 = vmatpush.bf16.msrb.mxu1 %v800_v40  ;;  %650 = vmatmul.msk.bf16.vlgmr.msra.gmra.mxu2 %vm953_vm6, %v649_v44 }
  0x24   :  { %504 = vmatpush.bf16.msra.mxu3 %v777_v0 }
  0x26   :  { %512 = vmatpush.bf16.msrb.mxu0 %v791_v46 }
  0x27   :  { %526 = vmatpush.bf16.msrb.mxu1 %v799_v47 }
  0x2a   :  { %513 = vmatpush.bf16.msrb.mxu0 %v790_v48 }
  0x2b   :  { %527 = vmatpush.bf16.msrb.mxu1 %v798_v50 }
  0x2e   :  { %514 = vmatpush.bf16.msrb.mxu0 %v789_v51 }
  0x2f   :  { %528 = vmatpush.bf16.msrb.mxu1 %v797_v53 }
  0x32   :  { %515 = vmatpush.bf16.msrb.mxu0 %v788_v54 }
  0x33   :  { %529 = vmatpush.bf16.msrb.mxu1 %v796_v56 }
  0x36   :  { %516 = vmatpush.bf16.msrb.mxu0 %v787_v57 }
  0x37   :  { %530 = vmatpush.bf16.msrb.mxu1 %v795_v59 }
  0x3a   :  { %517 = vmatpush.bf16.msrb.mxu0 %v786_v60 }
  0x3b   :  { %531 = vmatpush.bf16.msrb.mxu1 %v794_v62 }
  0x3e   :  { %518 = vmatpush.bf16.msrb.mxu0 %v785_v63 }
  0x3f   :  { %532 = vmatpush.bf16.msrb.mxu1 %v793_v1 }
  0x9e   :  { %v251_v3 = vpop.f32.mrf.mxu0 }
  0x9f   :  { %v252_v4 = vadd.f32 %v802_v2, %v251_v3  ;;  %v265_v5 = vpop.f32.mrf.mxu1 }
  0xa1   :  { %v266_v6 = vadd.f32 %v265_v5, %v252_v4 }
  0xa6   :  { %v279_v7 = vpop.f32.mrf.mxu2  ;;  %v253_v8 = vpop.f32.mrf.mxu0 }
  0xa7   :  { %v254_v9 = vadd.f32 %v802_v2, %v253_v8  ;;  %v280_v10 = vadd.f32 %v279_v7, %v266_v6  ;;  %v267_v11 = vpop.f32.mrf.mxu1 }
  0xa9   :  { %v268_v12 = vadd.f32 %v267_v11, %v254_v9  ;;  %v284_v13 = vmax.f32 %v280_v10, 0.0 }
  0xab   :  { %v286_v17 = vrot.slane %v284_v13, 7  ;;  %v292_v18 = vrot.slane %v284_v13, 1 }
  0xae   :  { %v281_v14 = vpop.f32.mrf.mxu2 }
  0xaf   :  { %v282_v15 = vadd.f32 %v281_v14, %v268_v12 }
  0xb1   :  { %v285_v16 = vmax.f32 %v282_v15, 0.0 }
  0xb3   :  { %v287_v19 = vrot.slane %v285_v16, 7  ;;  %v293_v20 = vrot.slane %v285_v16, 1  ;;  %v299_v24 = vpack.c.bf16 %v285_v16, %v284_v13 }
  0xb5   :  { %519 = vmatmul.bf16.vlgmr.msrb.gmra.mxu0 %v299_v24  ;;  %v288_v25 = vsel %vm31_vm0, %v286_v17, %v287_v19  ;;  %v289_v26 = vsel %vm31_vm0, %v287_v19, %v286_v17  ;;  %v294_v27 = vsel %vm38_vm1, %v292_v18, %v293_v20  ;;  %v295_v28 = vsel %vm38_vm1, %v293_v20, %v292_v18 }
  0xb6   :  { %v748_v29 = vpack.c.bf16 %v288_v25, %v289_v26  ;;  %v751_v30 = vpack.c.bf16 %v295_v28, %v294_v27 }
  0xb8   :  { %749 = vmatmul.msk.bf16.vlgmr.msra.gmra.mxu3 %vm949_vm5, %v748_v29  ;;  %752 = vmatmul.msk.bf16.vlgmr.msrb.gmra.mxu1 %vm953_vm6, %v751_v30 }
 0x132   :  { %v520_v32 = vpop.f32.mrf.mxu0 }
 0x135   :  { %v534_v35 = vpop.f32.mrf.mxu1 }
 0x13a   :  { %v522_v41 = vpop.f32.mrf.mxu0 }
 0x13b   :  { %v506_v33 = vpop.f32.mrf.mxu3 }
 0x13c   :  { %v507_v34 = vadd.f32 %v803_v31, %v506_v33 }
 0x13d   :  { %v536_v43 = vpop.f32.mrf.mxu1 }
 0x13e   :  { %v521_v36 = vadd.f32 %v520_v32, %v507_v34 }
 0x140   :  { %v535_v37 = vadd.f32 %v534_v35, %v521_v36 }
 0x142   :  { %v539_v23 = vadd.f32 %v535_v37, %v898_v21 }
 0x143   :  { %v508_v38 = vpop.f32.mrf.mxu3 }
 0x144   :  { %v541_v39 = vmax.f32 %v539_v23, 0.0  ;;  %v509_v40 = vadd.f32 %v803_v31, %v508_v38 }
 0x146   :  { %543 = vst [vmem:[%s1052_s5] sm:$0xff] %v541_v39  ;;  %v523_v42 = vadd.f32 %v522_v41, %v509_v40 }
 0x148   :  { %v537_v44 = vadd.f32 %v536_v43, %v523_v42 }
 0x14a   :  { %v540_v45 = vadd.f32 %v537_v44, %v903_v22 }
 0x14c   :  { %v542_v46 = vmax.f32 %v540_v45, 0.0 }
 0x14e   :  { %544 = vst [vmem:[%s1052_s5 + $0x8] sm:$0xff] %v542_v46 }

</bundles_post_ra>
